<compile_context>
chip_gen: v7x
topology: tpu7x:2x2x1
jax: 0.10.0
libtpu: 0.0.40
codegen_flags: <defaults>
</compile_context>

<pallas_src>
import math

import numpy as np
import jax
import jax.numpy as jnp
from jax.experimental import pallas as pl
from jax.experimental.pallas import tpu as pltpu


def _disc_last_kernel(x_ref, wconv_ref, bconv_ref, w0_ref, b0_ref, w1_ref, out_ref):
    # x_ref: (B, 16*Cin)  rows = samples, lanes = p*Cin + c  (p = h*4 + w)
    # Conv as one dense block matmul (weights pre-expanded / pre-scaled in the wrapper),
    # bias and sqrt(2) Amplify folded in, LeakyReLU(0.2).
    y = jnp.dot(x_ref[...], wconv_ref[...], preferred_element_type=jnp.float32)
    y = y + bconv_ref[...]
    y = jnp.where(y >= 0.0, y, 0.2 * y)          # (B, 16*oC), lanes = q*oC + c

    # flatten + fc0 (weight pre-permuted to the (pixel, channel) lane order) + LeakyReLU
    h = jnp.dot(y, w0_ref[...], preferred_element_type=jnp.float32)
    h = h + b0_ref[...]
    h = jnp.where(h >= 0.0, h, 0.2 * h)

    # fc1 (no bias) -> (B, 1)
    out_ref[...] = jnp.dot(h, w1_ref[...], preferred_element_type=jnp.float32)


def _pick_batch_block(n, cap=128):
    """Largest batch block <= cap that divides n and satisfies the sublane rule."""
    if n <= cap:
        return n                        # whole batch -> single grid step
    for b in range(cap, 7, -1):
        if n % b == 0 and b % 8 == 0:
            return b
    return n


def discriminator_last_block(x, params, *, mbstd_group_size, mbstd_num_features,
                             block_b=None):
    """x: (N, C, 4, 4) float32.  Returns (N, 1) scores, matching the PyTorch module."""
    N, C, H, W = x.shape
    assert (H, W) == (4, 4), "DiscriminatorLastBlock operates on 4x4 feature maps"
    F = mbstd_num_features
    group = min(N, mbstd_group_size)
    assert N % group == 0
    M = N // group

    # ---- minibatch stddev: batch-GLOBAL strided group reduction -> wrapper glue.
    # TODO(synk): mbstd couples samples across the whole batch (groups strided by
    # N//group), so it is computed once here in plain JAX (negligible FLOPs) and fed to
    # the kernel as one extra input channel.
    xg = x.reshape(group, M, F, C // F, H, W)
    sd = jnp.sqrt(jnp.var(xg, axis=0) + 1e-8)               # (M, F, C//F, H, W)
    sd = sd.mean(axis=(2, 3, 4), keepdims=True)[:, :, 0]    # (M, F, 1, 1)
    sd = jnp.tile(sd, (group, 1, H, W))                     # (N, F, 4, 4)
    xcat = jnp.concatenate([x, sd], axis=1)                 # (N, Cin, 4, 4)
    Cin = C + F

    oC = params["conv_weight"].shape[0]
    fcC = params["fc0_weight"].shape[0]
    assert params["conv_weight"].shape[1] == Cin
    assert params["fc0_weight"].shape[1] == oC * 16

    B = _pick_batch_block(N) if block_b is None else block_b
    assert N % B == 0 and (B == N or B % 8 == 0)
    nb = N // B

    # ---- input layout: rows = samples, lanes = p*Cin + c with p = h*4 + w
    xflat = jnp.transpose(xcat, (0, 2, 3, 1)).reshape(N, 16 * Cin)

    # ---- hoisted batch-invariant precompute (equalized-LR scales + sqrt(2) folded in)
    sqrt2 = math.sqrt(2.0)

    # 3x3/pad-1 conv on a fixed 4x4 grid == one dense (16*Cin, 16*oC) matrix.
    # sel[p_out, ky, kx, p_in] = 1 iff input pixel p_in is the (ky, kx) tap of p_out.
    sel = np.zeros((16, 3, 3, 16), np.float32)
    for q in range(16):
        hq, wq = divmod(q, 4)
        for ky in range(3):
            for kx in range(3):
                hi, wi = hq + ky - 1, wq + kx - 1
                if 0 <= hi < 4 and 0 <= wi < 4:
                    sel[q, ky, kx, hi * 4 + wi] = 1.0
    conv_scale = 1.0 / math.sqrt(Cin * 9)                    # equalized-LR fan-in
    wconv = (jnp.einsum("qyxp,oiyx->piqo", jnp.asarray(sel), params["conv_weight"],
                        precision=jax.lax.Precision.HIGHEST)
             .reshape(16 * Cin, 16 * oC) * (conv_scale * sqrt2))
    bconv = jnp.tile(params["conv_bias"] * sqrt2, 16).reshape(1, 16 * oC)

    # fc0: PyTorch flattens the conv output as c*16 + q; our lanes are q*oC + c.
    fc0_scale = 1.0 / math.sqrt(oC * 16)
    w0 = (params["fc0_weight"].reshape(fcC, oC, 16)          # [j, c, q]
          .transpose(2, 1, 0)                                # [q, c, j]
          .reshape(16 * oC, fcC) * (fc0_scale * sqrt2))
    b0 = (params["fc0_bias"] * sqrt2).reshape(1, fcC)

    fc1_scale = 1.0 / math.sqrt(fcC)
    w1 = jnp.transpose(params["fc1_weight"], (1, 0)) * fc1_scale     # (fcC, 1)

    out = pl.pallas_call(
        _disc_last_kernel,
        grid=(nb,),
        in_specs=[
            pl.BlockSpec((B, 16 * Cin), lambda n: (n, 0)),        # batch block
            pl.BlockSpec((16 * Cin, 16 * oC), lambda n: (0, 0)),  # block-conv weight
            pl.BlockSpec((1, 16 * oC), lambda n: (0, 0)),         # conv bias (per pixel)
            pl.BlockSpec((16 * oC, fcC), lambda n: (0, 0)),       # fc0 weight
            pl.BlockSpec((1, fcC), lambda n: (0, 0)),             # fc0 bias
            pl.BlockSpec((fcC, 1), lambda n: (0, 0)),             # fc1 weight
        ],
        out_specs=pl.BlockSpec((B, 1), lambda n: (n, 0)),
        out_shape=jax.ShapeDtypeStruct((N, 1), jnp.float32),
        compiler_params=pltpu.CompilerParams(dimension_semantics=("parallel",)),
    )(xflat, wconv, bconv, w0, b0, w1)
    return out


def _reference(x, params, mbstd_group_size, mbstd_num_features):
    """Pure-JAX reference mirroring the PyTorch module (same equalized-LR convention)."""
    N, C, H, W = x.shape
    F = mbstd_num_features
    group = min(N, mbstd_group_size)
    M = N // group
    xg = x.reshape(group, M, F, C // F, H, W)
    sd = jnp.sqrt(jnp.var(xg, axis=0) + 1e-8)
    sd = sd.mean(axis=(2, 3, 4), keepdims=True)[:, :, 0]
    sd = jnp.tile(sd, (group, 1, H, W))
    out = jnp.concatenate([x, sd], axis=1)                 # (N, Cin, 4, 4)
    Cin = C + F

    conv_w = params["conv_weight"] * (1.0 / math.sqrt(Cin * 9))
    out = jax.lax.conv_general_dilated(
        out, conv_w, (1, 1), ((1, 1), (1, 1)),
        dimension_numbers=("NCHW", "OIHW", "NCHW"))
    out = out + params["conv_bias"].reshape(1, -1, 1, 1)
    out = out * math.sqrt(2.0)
    out = jnp.where(out >= 0, out, 0.2 * out)

    v = out.reshape(N, -1)
    h0 = v @ (params["fc0_weight"] * (1.0 / math.sqrt(v.shape[1]))).T
    h0 = h0 + params["fc0_bias"]
    h0 = h0 * math.sqrt(2.0)
    h0 = jnp.where(h0 >= 0, h0, 0.2 * h0)
    return h0 @ (params["fc1_weight"] * (1.0 / math.sqrt(h0.shape[1]))).T


if __name__ == "__main__":
    N = 16                      # batch
    in_fmaps = 16               # C
    in_fmaps_fc = 16
    mbstd_group_size = 4
    mbstd_num_features = 1
    Cin = in_fmaps + mbstd_num_features

    key = jax.random.PRNGKey(0)
    ks = jax.random.split(key, 6)
    params = {
        "conv_weight": jax.random.normal(ks[0], (in_fmaps, Cin, 3, 3), jnp.float32),
        "conv_bias":   jax.random.normal(ks[1], (in_fmaps,), jnp.float32) * 0.1,
        "fc0_weight":  jax.random.normal(ks[2], (in_fmaps_fc, in_fmaps_fc * 16), jnp.float32),
        "fc0_bias":    jax.random.normal(ks[3], (in_fmaps_fc,), jnp.float32) * 0.1,
        "fc1_weight":  jax.random.normal(ks[4], (1, in_fmaps_fc), jnp.float32),
    }
    x = jax.random.normal(ks[5], (N, in_fmaps, 4, 4), jnp.float32)

    out = discriminator_last_block(
        x, params,
        mbstd_group_size=mbstd_group_size,
        mbstd_num_features=mbstd_num_features)
    jax.block_until_ready(out)

    assert out.shape == (N, 1)
    ref = _reference(x, params, mbstd_group_size, mbstd_num_features)
    np.testing.assert_allclose(np.asarray(out), np.asarray(ref), rtol=1e-4, atol=1e-4)
    print("KERNEL_OK")
</pallas_src>

<mosaic_0001>
module attributes {stable_mosaic.version = 11 : i64} {
  func.func @_disc_last_kernel(%arg0: i32, %arg1: memref<16x272xf32, #tpu.memory_space<vmem>>, %arg2: memref<272x256xf32, #tpu.memory_space<vmem>>, %arg3: memref<1x256xf32, #tpu.memory_space<vmem>>, %arg4: memref<256x16xf32, #tpu.memory_space<vmem>>, %arg5: memref<1x16xf32, #tpu.memory_space<vmem>>, %arg6: memref<16x1xf32, #tpu.memory_space<vmem>>, %arg7: memref<16x1xf32, #tpu.memory_space<vmem>>) attributes {dimension_semantics = [#tpu.dimension_semantics<parallel>], iteration_bounds = array<i64: 1>, scalar_prefetch = 0 : i64, scratch_operands = 0 : i64, tpu.core_type = #tpu.core_type<tc>, window_params = [{transform_indices = @transform_0, window_bounds = array<i64: 16, 272>}, {pipeline_mode = #tpu.pipeline_mode<synchronous>, transform_indices = @transform_1, window_bounds = array<i64: 272, 256>}, {pipeline_mode = #tpu.pipeline_mode<synchronous>, transform_indices = @transform_2, window_bounds = array<i64: 1, 256>}, {pipeline_mode = #tpu.pipeline_mode<synchronous>, transform_indices = @transform_3, window_bounds = array<i64: 256, 16>}, {pipeline_mode = #tpu.pipeline_mode<synchronous>, transform_indices = @transform_4, window_bounds = array<i64: 1, 16>}, {pipeline_mode = #tpu.pipeline_mode<synchronous>, transform_indices = @transform_5, window_bounds = array<i64: 16, 1>}, {transform_indices = @transform_6, window_bounds = array<i64: 16, 1>}]} {
    %c0 = arith.constant 0 : index
    %c0_0 = arith.constant 0 : index
    %0 = vector.load %arg1[%c0, %c0_0] : memref<16x272xf32, #tpu.memory_space<vmem>>, vector<16x272xf32>
    %c0_1 = arith.constant 0 : index
    %c0_2 = arith.constant 0 : index
    %1 = vector.load %arg2[%c0_1, %c0_2] : memref<272x256xf32, #tpu.memory_space<vmem>>, vector<272x256xf32>
    %cst = arith.constant dense<0.000000e+00> : vector<16x256xf32>
    %2 = tpu.matmul %0, %1, %cst {dimension_numbers = #tpu.dot_dimension_numbers<[1], [0], [0], [1], [0, 0, 1, 1], [], []>} : vector<16x272xf32>, vector<272x256xf32>, vector<16x256xf32> -> vector<16x256xf32>
    %c0_3 = arith.constant 0 : index
    %c0_4 = arith.constant 0 : index
    %3 = vector.load %arg3[%c0_3, %c0_4] : memref<1x256xf32, #tpu.memory_space<vmem>>, vector<1x256xf32>
    %4 = vector.broadcast %3 : vector<1x256xf32> to vector<16x256xf32>
    %5 = arith.addf %2, %4 : vector<16x256xf32>
    %cst_5 = arith.constant 0.000000e+00 : f32
    %6 = vector.broadcast %cst_5 : f32 to vector<16x256xf32>
    %7 = arith.cmpf oge, %5, %6 : vector<16x256xf32>
    %cst_6 = arith.constant 2.000000e-01 : f32
    %8 = vector.broadcast %cst_6 : f32 to vector<16x256xf32>
    %9 = arith.mulf %8, %5 : vector<16x256xf32>
    %10 = arith.select %7, %5, %9 : vector<16x256xi1>, vector<16x256xf32>
    %c0_7 = arith.constant 0 : index
    %c0_8 = arith.constant 0 : index
    %11 = vector.load %arg4[%c0_7, %c0_8] : memref<256x16xf32, #tpu.memory_space<vmem>>, vector<256x16xf32>
    %cst_9 = arith.constant dense<0.000000e+00> : vector<16x16xf32>
    %12 = tpu.matmul %10, %11, %cst_9 {dimension_numbers = #tpu.dot_dimension_numbers<[1], [0], [0], [1], [0, 0, 1, 1], [], []>} : vector<16x256xf32>, vector<256x16xf32>, vector<16x16xf32> -> vector<16x16xf32>
    %c0_10 = arith.constant 0 : index
    %c0_11 = arith.constant 0 : index
    %13 = vector.load %arg5[%c0_10, %c0_11] : memref<1x16xf32, #tpu.memory_space<vmem>>, vector<1x16xf32>
    %14 = vector.broadcast %13 : vector<1x16xf32> to vector<16x16xf32>
    %15 = arith.addf %12, %14 : vector<16x16xf32>
    %cst_12 = arith.constant 0.000000e+00 : f32
    %16 = vector.broadcast %cst_12 : f32 to vector<16x16xf32>
    %17 = arith.cmpf oge, %15, %16 : vector<16x16xf32>
    %cst_13 = arith.constant 2.000000e-01 : f32
    %18 = vector.broadcast %cst_13 : f32 to vector<16x16xf32>
    %19 = arith.mulf %18, %15 : vector<16x16xf32>
    %20 = arith.select %17, %15, %19 : vector<16x16xi1>, vector<16x16xf32>
    %c0_14 = arith.constant 0 : index
    %c0_15 = arith.constant 0 : index
    %21 = vector.load %arg6[%c0_14, %c0_15] : memref<16x1xf32, #tpu.memory_space<vmem>>, vector<16x1xf32>
    %cst_16 = arith.constant dense<0.000000e+00> : vector<16x1xf32>
    %22 = tpu.matmul %20, %21, %cst_16 {dimension_numbers = #tpu.dot_dimension_numbers<[1], [0], [0], [1], [0, 0, 1, 1], [], []>} : vector<16x16xf32>, vector<16x1xf32>, vector<16x1xf32> -> vector<16x1xf32>
    %c0_17 = arith.constant 0 : index
    %c0_18 = arith.constant 0 : index
    %23 = vector.load %arg7[%c0_17, %c0_18] : memref<16x1xf32, #tpu.memory_space<vmem>>, vector<16x1xf32>
    tpu.vector_store %arg7[%c0_17, %c0_18], %22 {strides = array<i32>} : memref<16x1xf32, #tpu.memory_space<vmem>>, vector<16x1xf32>,
    return
  }
  func.func @transform_0(%arg0: i32) -> (i32, i32) {
    %c0_i32 = arith.constant 0 : i32
    %c0_i32_0 = arith.constant 0 : i32
    return %arg0, %c0_i32 : i32, i32
  }
  func.func @transform_1(%arg0: i32) -> (i32, i32) {
    %c0_i32 = arith.constant 0 : i32
    %c0_i32_0 = arith.constant 0 : i32
    %c0_i32_1 = arith.constant 0 : i32
    return %c0_i32, %c0_i32_0 : i32, i32
  }
  func.func @transform_2(%arg0: i32) -> (i32, i32) {
    %c0_i32 = arith.constant 0 : i32
    %c0_i32_0 = arith.constant 0 : i32
    %c0_i32_1 = arith.constant 0 : i32
    return %c0_i32, %c0_i32_0 : i32, i32
  }
  func.func @transform_3(%arg0: i32) -> (i32, i32) {
    %c0_i32 = arith.constant 0 : i32
    %c0_i32_0 = arith.constant 0 : i32
    %c0_i32_1 = arith.constant 0 : i32
    return %c0_i32, %c0_i32_0 : i32, i32
  }
  func.func @transform_4(%arg0: i32) -> (i32, i32) {
    %c0_i32 = arith.constant 0 : i32
    %c0_i32_0 = arith.constant 0 : i32
    %c0_i32_1 = arith.constant 0 : i32
    return %c0_i32, %c0_i32_0 : i32, i32
  }
  func.func @transform_5(%arg0: i32) -> (i32, i32) {
    %c0_i32 = arith.constant 0 : i32
    %c0_i32_0 = arith.constant 0 : i32
    %c0_i32_1 = arith.constant 0 : i32
    return %c0_i32, %c0_i32_0 : i32, i32
  }
  func.func @transform_6(%arg0: i32) -> (i32, i32) {
    %c0_i32 = arith.constant 0 : i32
    %c0_i32_0 = arith.constant 0 : i32
    return %arg0, %c0_i32 : i32, i32
  }
}

</mosaic_0001>

<bundles_post_ra>
// kernel: tpu_custom_call.1
= control target key start
LH: loop header
LB: loop body
LE: loop exit
PB: predicated region body
PF: predicated region fallthrough
CT: control target
= control target key end

     0   :  { %11 = vsyncpa [#allocation3], 0  ;;  %s701_s21 = smov [#allocation2]   ;;  %s890_s0 = inlined_call_operand.vmem [shape: f32[16,272], index: 0, kind: input, shape index: {}]   ;;  %s891_s1 = inlined_call_operand.hbm [shape: f32[272,256], index: 1, kind: input, shape index: {}]   ;;  %s892_s2 = inlined_call_operand.vmem [shape: f32[1,256], index: 2, kind: input, shape index: {}]   ;;  %s893_s3 = inlined_call_operand.vmem [shape: f32[256,16], index: 3, kind: input, shape index: {}]   ;;  %s894_s4 = inlined_call_operand.vmem [shape: f32[1,16], index: 4, kind: input, shape index: {}]   ;;  %s895_s5 = inlined_call_operand.vmem [shape: f32[16,1], index: 5, kind: input, shape index: {}]   ;;  %s896_s6 = inlined_call_operand.vmem [shape: f32[16,1], index: 6, kind: output, shape index: {}]  }
   0x1   :  { %s19_s22 = sshll.u32 %s701_s21, 4  ;;  %s677_s25 = scalar_lea.hbm %s891_s1, 8704  ;;  %s20_s22 = int_to_ptr.vmem [resolvable:$true] %s19_s22 }
   0x2   :  { %p678_p0 = scmp.ne.s32.totalorder %s891_s1, %s677_s25  ;;  %p681_p1 = scmp.lt.u32.totalorder %s677_s25, %s891_s1 }
   0x4   :  { %p683_p2 = pnand %p681_p1, %p678_p0 }
   0x6   :  { %686 = shalt.err (!%p683_p2)
}
   0x7   :  { %s687_s30 = scalar_lea.vmem %s20_s22, 8704  ;;  %p692_p4 = scmp.lt.s32.totalorder %s20_s22, %s20_s22 }
   0x8   :  { %p688_p3 = scmp.ne.s32.totalorder %s20_s22, %s687_s30  ;;  %p693_p5 = scmp.lt.s32.totalorder %s687_s30, %s687_s30 }
   0xa   :  { %p694_p6 = por %p693_p5, %p692_p4 }
   0xc   :  { %p695_p7 = pnand %p694_p6, %p688_p3 }
   0xe   :  { %698 = shalt.err (!%p695_p7)
}
   0xf   :  { %s702_s7 = smov 256   ;;  %s703_s8 = smov 16  }
  0x10   :  { %25 = dma.hbm_to_vmem [thread:$0]  %s891_s1, 8704, %s20_s22, [#allocation3], %s702_s7, %s702_s7, %s703_s8  }
  0x11   :  { %699 = dma.done.wait [#allocation3], 8704  }
  0x12   :  { %700 = vsyncadd [#allocation3], 4294958592  ;;  %v704_v0 = vmov 0.0   ;;  %v44_v1 = vld [vmem:[#allocation2 + $0x8] sm:$0xff]  ;;  %v46_v2 = vld [vmem:[#allocation2 + $0x18] sm:$0xff]  ;;  %vm123_vm0 = vcmask 130048  }
  0x13   :  { %271 = vmatprep.mubr.f32.mxu1 %v704_v0  ;;  %v43_v3 = vld [vmem:[#allocation2] sm:$0xff]  ;;  %v561_v4 = vpack.c.bf16 %v46_v2, %v44_v1  ;;  %v45_v5 = vld [vmem:[#allocation2 + $0x10] sm:$0xff]  ;;  %v48_v6 = vld [vmem:[#allocation2 + $0x28] sm:$0xff]  ;;  %vm499_vm7 = vcmask 7168  }
  0x14   :  { %v50_v7 = vld [vmem:[#allocation2 + $0x38] sm:$0xff]  ;;  %v563_v8 = vpack.c.bf16 %v45_v5, %v43_v3  ;;  %v47_v10 = vld [vmem:[#allocation2 + $0x20] sm:$0xff]  ;;  %v49_v11 = vld [vmem:[#allocation2 + $0x30] sm:$0xff] }
  0x15   :  { %v565_v9 = vpack.c.bf16 %v50_v7, %v48_v6  ;;  %v52_v12 = vld [vmem:[#allocation2 + $0x48] sm:$0xff]  ;;  %562 = vmatprep.subr.bf16.mxu0 %v561_v4  ;;  %v54_v13 = vld [vmem:[#allocation2 + $0x58] sm:$0xff]  ;;  %v567_v14 = vpack.c.bf16 %v49_v11, %v47_v10  ;;  %v51_v16 = vld [vmem:[#allocation2 + $0x40] sm:$0xff] }
  0x16   :  { %564 = vmatpush1.bf16.msra.mxu0 %v563_v8  ;;  %v569_v15 = vpack.c.bf16 %v54_v13, %v52_v12  ;;  %v53_v17 = vld [vmem:[#allocation2 + $0x50] sm:$0xff]  ;;  %v56_v18 = vld [vmem:[#allocation2 + $0x68] sm:$0xff]  ;;  %v58_v19 = vld [vmem:[#allocation2 + $0x78] sm:$0xff] }
  0x17   :  { %566 = vmatprep.subr.bf16.mxu0 %v565_v9  ;;  %v571_v20 = vpack.c.bf16 %v53_v17, %v51_v16  ;;  %v573_v21 = vpack.c.bf16 %v58_v19, %v56_v18  ;;  %v55_v22 = vld [vmem:[#allocation2 + $0x60] sm:$0xff]  ;;  %v57_v23 = vld [vmem:[#allocation2 + $0x70] sm:$0xff]  ;;  %v60_v24 = vld [vmem:[#allocation2 + $0x88] sm:$0xff] }
  0x18   :  { %v62_v25 = vld [vmem:[#allocation2 + $0x98] sm:$0xff]  ;;  %v575_v26 = vpack.c.bf16 %v57_v23, %v55_v22  ;;  %v59_v28 = vld [vmem:[#allocation2 + $0x80] sm:$0xff]  ;;  %v61_v29 = vld [vmem:[#allocation2 + $0x90] sm:$0xff] }
  0x19   :  { %v577_v27 = vpack.c.bf16 %v62_v25, %v60_v24  ;;  %v64_v30 = vld [vmem:[#allocation2 + $0xa8] sm:$0xff]  ;;  %v66_v31 = vld [vmem:[#allocation2 + $0xb8] sm:$0xff]  ;;  %v579_v32 = vpack.c.bf16 %v61_v29, %v59_v28  ;;  %v63_v34 = vld [vmem:[#allocation2 + $0xa0] sm:$0xff] }
  0x1a   :  { %568 = vmatpush1.bf16.msra.mxu0 %v567_v14  ;;  %v581_v33 = vpack.c.bf16 %v66_v31, %v64_v30  ;;  %v65_v35 = vld [vmem:[#allocation2 + $0xb0] sm:$0xff]  ;;  %v68_v36 = vld [vmem:[#allocation2 + $0xc8] sm:$0xff]  ;;  %v70_v37 = vld [vmem:[#allocation2 + $0xd8] sm:$0xff] }
  0x1b   :  { %570 = vmatprep.subr.bf16.mxu0 %v569_v15  ;;  %v583_v38 = vpack.c.bf16 %v65_v35, %v63_v34  ;;  %v67_v39 = vld [vmem:[#allocation2 + $0xc0] sm:$0xff]  ;;  %v69_v40 = vld [vmem:[#allocation2 + $0xd0] sm:$0xff]  ;;  %v72_v41 = vld [vmem:[#allocation2 + $0xe8] sm:$0xff]  ;;  %v585_v42 = vpack.c.bf16 %v70_v37, %v68_v36 }
  0x1c   :  { %v74_v43 = vld [vmem:[#allocation2 + $0xf8] sm:$0xff]  ;;  %v108_v44 = vld [vmem:[#allocation2 + $0x208] sm:$0xff]  ;;  %v107_v47 = vld [vmem:[#allocation2 + $0x200] sm:$0xff]  ;;  %v587_v53 = vpack.c.bf16 %v69_v40, %v67_v39 }
  0x1d   :  { %v110_v45 = vld [vmem:[#allocation2 + $0x218] sm:$0xff]  ;;  %v109_v48 = vld [vmem:[#allocation2 + $0x210] sm:$0xff]  ;;  %v38_v49 = vld [vmem:[%s890_s0 + $0x8] sm:$0xff]  ;;  %v589_v57 = vpack.c.bf16 %v74_v43, %v72_v41 }
  0x1e   :  { %572 = vmatpush1.bf16.msra.mxu0 %v571_v20  ;;  %v625_v46 = vpack.c.bf16 %v110_v45, %v108_v44  ;;  %v71_v50 = vld [vmem:[#allocation2 + $0xe0] sm:$0xff]  ;;  %v73_v51 = vld [vmem:[#allocation2 + $0xf0] sm:$0xff]  ;;  %v627_v52 = vpack.c.bf16 %v109_v48, %v107_v47  ;;  %194 = vmatprep.mubr.f32.mxu0 %v38_v49  ;;  %v76_v54 = vld [vmem:[#allocation2 + $0x108] sm:$0xff] }
  0x1f   :  { %574 = vmatprep.subr.bf16.mxu0 %v573_v21  ;;  %v39_v55 = vld [vmem:[%s890_s0 + $0x10] sm:$0xff]  ;;  %v312_v56 = vld [vmem:[%s893_s3 + $0x80] sm:$0xff]  ;;  %v313_v58 = vld [vmem:[%s893_s3 + $0x88] sm:$0xff]  ;;  %v591_v4 = vpack.c.bf16 %v73_v51, %v71_v50 }
  0x20   :  { %626 = vmatprep.subr.bf16.mxu1 %v625_v46  ;;  %v296_v59 = vld [vmem:[%s893_s3] sm:$0xff]  ;;  %v297_v60 = vld [vmem:[%s893_s3 + $0x8] sm:$0xff]  ;;  %v78_v61 = vld [vmem:[#allocation2 + $0x118] sm:$0xff]  ;;  %v629_v62 = vpack.c.bf16 %v313_v58, %v312_v56 }
  0x21   :  { %628 = vmatpush1.bf16.msra.mxu1 %v627_v52  ;;  %v314_v63 = vld [vmem:[%s893_s3 + $0x90] sm:$0xff]  ;;  %v315_v1 = vld [vmem:[%s893_s3 + $0x98] sm:$0xff]  ;;  %v75_v2 = vld [vmem:[#allocation2 + $0x100] sm:$0xff]  ;;  %v631_v3 = vpack.c.bf16 %v297_v60, %v296_v59  ;;  %v593_v8 = vpack.c.bf16 %v78_v61, %v76_v54 }
  0x22   :  { %576 = vmatpush1.bf16.msra.mxu0 %v575_v26  ;;  %v77_v5 = vld [vmem:[#allocation2 + $0x110] sm:$0xff]  ;;  %v299_v7 = vld [vmem:[%s893_s3 + $0x18] sm:$0xff]  ;;  %v42_v9 = vld [vmem:[%s890_s0 + $0x28] sm:$0xff]  ;;  %v633_v10 = vpack.c.bf16 %v315_v1, %v314_v63  ;;  %630 = vmatprep.subr.bf16.mxu1 %v629_v62 }
  0x23   :  { %578 = vmatprep.subr.bf16.mxu0 %v577_v27  ;;  %v298_v6 = vld [vmem:[%s893_s3 + $0x10] sm:$0xff]  ;;  %v316_v11 = vld [vmem:[%s893_s3 + $0xa0] sm:$0xff]  ;;  %v317_v12 = vld [vmem:[%s893_s3 + $0xa8] sm:$0xff] }
  0x24   :  { %507 = vmatmul.mubr.msk.f32.vlgmr.msra.gmra.mrb[0].mxu1 %vm123_vm0, %v39_v55  ;;  %v80_v13 = vld [vmem:[#allocation2 + $0x128] sm:$0xff]  ;;  %v82_v14 = vld [vmem:[#allocation2 + $0x138] sm:$0xff]  ;;  %v635_v15 = vpack.c.bf16 %v299_v7, %v298_v6  ;;  %v79_v16 = vld [vmem:[#allocation2 + $0x120] sm:$0xff]  ;;  %v637_v17 = vpack.c.bf16 %v317_v12, %v316_v11 }
  0x25   :  { %277 = vmatprep.mubr.f32.mxu1 %v704_v0  ;;  %632 = vmatpush3.bf16.msra.mxu1 %v631_v3  ;;  %v595_v0 = vpack.c.bf16 %v77_v5, %v75_v2  ;;  %v300_v18 = vld [vmem:[%s893_s3 + $0x20] sm:$0xff]  ;;  %v301_v19 = vld [vmem:[%s893_s3 + $0x28] sm:$0xff]  ;;  %v597_v20 = vpack.c.bf16 %v82_v14, %v80_v13  ;;  %v81_v21 = vld [vmem:[#allocation2 + $0x130] sm:$0xff] }
  0x26   :  { %580 = vmatpush1.bf16.msra.mxu0 %v579_v32  ;;  %634 = vmatprep.subr.bf16.mxu1 %v633_v10  ;;  %v318_v22 = vld [vmem:[%s893_s3 + $0xb0] sm:$0xff]  ;;  %v319_v23 = vld [vmem:[%s893_s3 + $0xb8] sm:$0xff]  ;;  %v84_v24 = vld [vmem:[#allocation2 + $0x148] sm:$0xff]  ;;  %v639_v26 = vpack.c.bf16 %v301_v19, %v300_v18  ;;  %v599_v27 = vpack.c.bf16 %v81_v21, %v79_v16 }
  0x27   :  { %582 = vmatprep.subr.bf16.mxu0 %v581_v33  ;;  %v86_v25 = vld [vmem:[#allocation2 + $0x158] sm:$0xff]  ;;  %v83_v28 = vld [vmem:[#allocation2 + $0x140] sm:$0xff]  ;;  %v641_v29 = vpack.c.bf16 %v319_v23, %v318_v22  ;;  %v302_v30 = vld [vmem:[%s893_s3 + $0x30] sm:$0xff] }
  0x28   :  { %508 = vmatmul.mubr.msk.f32.gmra.mrb[2].mxu1 %vm123_vm0, %v42_v9  ;;  %v303_v31 = vld [vmem:[%s893_s3 + $0x38] sm:$0xff]  ;;  %v601_v32 = vpack.c.bf16 %v86_v25, %v84_v24  ;;  %v85_v33 = vld [vmem:[#allocation2 + $0x150] sm:$0xff]  ;;  %v320_v34 = vld [vmem:[%s893_s3 + $0xc0] sm:$0xff] }
  0x29   :  { %636 = vmatpush3.bf16.msra.mxu1 %v635_v15  ;;  %v321_v35 = vld [vmem:[%s893_s3 + $0xc8] sm:$0xff]  ;;  %v90_v37 = vld [vmem:[#allocation2 + $0x178] sm:$0xff]  ;;  %v603_v39 = vpack.c.bf16 %v85_v33, %v83_v28  ;;  %v87_v40 = vld [vmem:[#allocation2 + $0x160] sm:$0xff]  ;;  %v113_v33 = vlaneseq }
  0x2a   :  { %584 = vmatpush1.bf16.msra.mxu0 %v583_v38  ;;  %638 = vmatprep.subr.bf16.mxu1 %v637_v17  ;;  %v88_v36 = vld [vmem:[#allocation2 + $0x168] sm:$0xff]  ;;  %v643_v38 = vpack.c.bf16 %v303_v31, %v302_v30  ;;  %v645_v41 = vpack.c.bf16 %v321_v35, %v320_v34  ;;  %v89_v45 = vld [vmem:[#allocation2 + $0x170] sm:$0xff]  ;;  %v323_v47 = vld [vmem:[%s893_s3 + $0xd8] sm:$0xff] }
  0x2b   :  { %586 = vmatprep.subr.bf16.mxu0 %v585_v42  ;;  %v304_v42 = vld [vmem:[%s893_s3 + $0x40] sm:$0xff]  ;;  %v305_v43 = vld [vmem:[%s893_s3 + $0x48] sm:$0xff]  ;;  %v605_v44 = vpack.c.bf16 %v90_v37, %v88_v36  ;;  %v322_v46 = vld [vmem:[%s893_s3 + $0xd0] sm:$0xff]  ;;  %v607_v51 = vpack.c.bf16 %v89_v45, %v87_v40  ;;  %v114_v34 = vshrl.u32 %v113_v33, 7 }
  0x2c   :  { %v92_v48 = vld [vmem:[#allocation2 + $0x188] sm:$0xff]  ;;  %v94_v49 = vld [vmem:[#allocation2 + $0x198] sm:$0xff]  ;;  %v647_v50 = vpack.c.bf16 %v305_v43, %v304_v42  ;;  %v649_v52 = vpack.c.bf16 %v323_v47, %v322_v46  ;;  %v91_v56 = vld [vmem:[#allocation2 + $0x180] sm:$0xff] }
  0x2d   :  { %640 = vmatpush3.bf16.msra.mxu1 %v639_v26  ;;  %v307_v54 = vld [vmem:[%s893_s3 + $0x58] sm:$0xff]  ;;  %v609_v55 = vpack.c.bf16 %v94_v49, %v92_v48  ;;  %v96_v58 = vld [vmem:[#allocation2 + $0x1a8] sm:$0xff]  ;;  %v95_v63 = vld [vmem:[#allocation2 + $0x1a0] sm:$0xff]  ;;  %v115_v35 = vsub.s32 0, %v114_v34  ;;  %v119_v37 = vsub.s32 1, %v114_v34 }
  0x2e   :  { %588 = vmatpush1.bf16.msra.mxu0 %v587_v53  ;;  %642 = vmatprep.subr.bf16.mxu1 %v641_v29  ;;  %v306_v53 = vld [vmem:[%s893_s3 + $0x50] sm:$0xff]  ;;  %v98_v59 = vld [vmem:[#allocation2 + $0x1b8] sm:$0xff]  ;;  %v100_v2 = vld [vmem:[#allocation2 + $0x1c8] sm:$0xff] }
  0x2f   :  { %590 = vmatprep.subr.bf16.mxu0 %v589_v57  ;;  %v93_v57 = vld [vmem:[#allocation2 + $0x190] sm:$0xff]  ;;  %v651_v60 = vpack.c.bf16 %v307_v54, %v306_v53  ;;  %v613_v62 = vpack.c.bf16 %v98_v59, %v96_v58  ;;  %v102_v3 = vld [vmem:[#allocation2 + $0x1d8] sm:$0xff]  ;;  %v99_v6 = vld [vmem:[#allocation2 + $0x1c0] sm:$0xff] }
  0x30   :  { %v611_v61 = vpack.c.bf16 %v93_v57, %v91_v56  ;;  %v97_v1 = vld [vmem:[#allocation2 + $0x1b0] sm:$0xff]  ;;  %v617_v5 = vpack.c.bf16 %v102_v3, %v100_v2  ;;  %v106_v9 = vld [vmem:[#allocation2 + $0x1f8] sm:$0xff]  ;;  %v103_v12 = vld [vmem:[#allocation2 + $0x1e0] sm:$0xff] }
  0x31   :  { %644 = vmatpush3.bf16.msra.mxu1 %v643_v38  ;;  %v101_v7 = vld [vmem:[#allocation2 + $0x1d0] sm:$0xff]  ;;  %v37_v15 = vld [vmem:[%s890_s0] sm:$0xff]  ;;  %v40_v16 = vld [vmem:[%s890_s0 + $0x18] sm:$0xff] }
  0x32   :  { %592 = vmatpush1.bf16.msra.mxu0 %v591_v4  ;;  %646 = vmatprep.subr.bf16.mxu1 %v645_v41  ;;  %v615_v4 = vpack.c.bf16 %v97_v1, %v95_v63  ;;  %v619_v10 = vpack.c.bf16 %v101_v7, %v99_v6  ;;  %v105_v13 = vld [vmem:[#allocation2 + $0x1f0] sm:$0xff]  ;;  %v324_v17 = vld [vmem:[%s893_s3 + $0xe0] sm:$0xff]  ;;  %v325_v18 = vld [vmem:[%s893_s3 + $0xe8] sm:$0xff] }
  0x33   :  { %594 = vmatprep.subr.bf16.mxu0 %v593_v8  ;;  %v104_v8 = vld [vmem:[#allocation2 + $0x1e8] sm:$0xff]  ;;  %v623_v14 = vpack.c.bf16 %v105_v13, %v103_v12  ;;  %v653_v19 = vpack.c.bf16 %v325_v18, %v324_v17  ;;  %v326_v23 = vld [vmem:[%s893_s3 + $0xf0] sm:$0xff]  ;;  %v327_v24 = vld [vmem:[%s893_s3 + $0xf8] sm:$0xff] }
  0x34   :  { %v621_v11 = vpack.c.bf16 %v106_v9, %v104_v8  ;;  %v309_v21 = vld [vmem:[%s893_s3 + $0x68] sm:$0xff]  ;;  %v657_v25 = vpack.c.bf16 %v327_v24, %v326_v23  ;;  %v310_v26 = vld [vmem:[%s893_s3 + $0x70] sm:$0xff]  ;;  %v111_v36 = vld [vmem:[%s892_s2] sm:$0x3] }
  0x35   :  { %648 = vmatpush3.bf16.msra.mxu1 %v647_v50  ;;  %v116_v38 = vrot.slane %v111_v36, %v115_v35  ;;  %v509_v1 = vld [vmem:[%s894_s4] ss:$0 sm:$0xff] }
  0x36   :  { %596 = vmatpush1.bf16.msra.mxu0 %v595_v0  ;;  %650 = vmatprep.subr.bf16.mxu1 %v649_v52  ;;  %v41_v0 = vld [vmem:[%s890_s0 + $0x20] sm:$0xff] }
  0x37   :  { %598 = vmatprep.subr.bf16.mxu0 %v597_v20  ;;  %v308_v20 = vld [vmem:[%s893_s3 + $0x60] sm:$0xff] }
  0x38   :  { %v655_v22 = vpack.c.bf16 %v309_v21, %v308_v20 }
  0x39   :  { %652 = vmatpush3.bf16.msra.mxu1 %v651_v60  ;;  %v416_v60 = vld [vmem:[%s895_s5] sm:$0xff] }
  0x3a   :  { %600 = vmatpush1.bf16.msra.mxu0 %v599_v27  ;;  %654 = vmatprep.subr.bf16.mxu1 %v653_v19  ;;  %v311_v27 = vld [vmem:[%s893_s3 + $0x78] sm:$0xff] }
  0x3b   :  { %602 = vmatprep.subr.bf16.mxu0 %v601_v32  ;;  %v659_v28 = vpack.c.bf16 %v311_v27, %v310_v26 }
  0x3d   :  { %656 = vmatpush3.bf16.msra.mxu1 %v655_v22 }
  0x3e   :  { %604 = vmatpush1.bf16.msra.mxu0 %v603_v39  ;;  %658 = vmatprep.subr.bf16.mxu1 %v657_v25  ;;  %v120_v39 = vrot.slane %v111_v36, %v119_v37 }
  0x3f   :  { %606 = vmatprep.subr.bf16.mxu0 %v605_v44 }
  0x41   :  { %660 = vmatpush3.bf16.msra.mxu1 %v659_v28 }
  0x42   :  { %608 = vmatpush1.bf16.msra.mxu0 %v607_v51 }
  0x43   :  { %610 = vmatprep.subr.bf16.mxu0 %v609_v55 }
  0x46   :  { %612 = vmatpush1.bf16.msra.mxu0 %v611_v61  ;;  %v417_v61 = vld [vmem:[%s895_s5 + $0x8] sm:$0xff] }
  0x47   :  { %614 = vmatprep.subr.bf16.mxu0 %v613_v62  ;;  %v661_v62 = vpack.c.bf16 %v417_v61, %v416_v60 }
  0x49   :  { %662 = vmatprep.subr.bf16.mxu1 %v661_v62 }
  0x4a   :  { %616 = vmatpush1.bf16.msra.mxu0 %v615_v4 }
  0x4b   :  { %618 = vmatprep.subr.bf16.mxu0 %v617_v5 }
  0x4e   :  { %620 = vmatpush1.bf16.msra.mxu0 %v619_v10 }
  0x4f   :  { %622 = vmatprep.subr.bf16.mxu0 %v621_v11 }
  0x52   :  { %624 = vmatpush1.bf16.msra.mxu0 %v623_v14 }
  0x55   :  { %195 = vmatmul.mubr.f32.vlgmr.msra.gmra.mrb[0].mxu0 %v37_v15 }
  0x56   :  { %200 = vmatprep.mubr.f32.mxu0 %v41_v0 }
  0x59   :  { %201 = vmatmul.mubr.f32.gmra.mrb[2].mxu0 %v40_v16 }
  0xf7   :  { %v273_v29 = vpop.f32.mrb[0].mxu1 }
  0xf8   :  { %v275_v30 = vpop.f32.mrb[1].mxu1 }
  0xfb   :  { %v279_v31 = vpop.f32.mrb[2].mxu1 }
  0xfc   :  { %v281_v32 = vpop.f32.mrb[3].mxu1 }
 0x128   :  { %v196_v40 = vpop.f32.mrb[0].mxu0 }
 0x129   :  { %v197_v41 = vadd.f32 %v196_v40, %v116_v38  ;;  %v198_v42 = vpop.f32.mrb[1].mxu0 }
 0x12a   :  { %v199_v43 = vadd.f32 %v198_v42, %v120_v39 }
 0x12b   :  { %v274_v44 = vadd.f32 %v273_v29, %v197_v41 }
 0x12c   :  { %v276_v45 = vadd.f32 %v275_v30, %v199_v43  ;;  %v202_v46 = vpop.f32.mrb[2].mxu0 }
 0x12d   :  { %v288_v47 = vmul.f32 0.2, %v274_v44  ;;  %v203_v48 = vadd.f32 %v202_v46, %v116_v38  ;;  %v204_v49 = vpop.f32.mrb[3].mxu0  ;;  %vm284_vm1 = vcmp.ge.f32.partialorder %v274_v44, 0.0 }
 0x12e   :  { %v289_v50 = vmul.f32 0.2, %v276_v45  ;;  %v205_v51 = vadd.f32 %v204_v49, %v120_v39  ;;  %vm285_vm2 = vcmp.ge.f32.partialorder %v276_v45, 0.0 }
 0x12f   :  { %v280_v52 = vadd.f32 %v279_v31, %v203_v48  ;;  %v292_v55 = vsel %vm284_vm1, %v274_v44, %v288_v47 }
 0x130   :  { %v282_v53 = vadd.f32 %v281_v32, %v205_v51  ;;  %v293_v54 = vsel %vm285_vm2, %v276_v45, %v289_v50 }
 0x131   :  { %v290_v56 = vmul.f32 0.2, %v280_v52  ;;  %399 = vmatprep.mubr.f32.mxu1 %v293_v54  ;;  %vm286_vm4 = vcmp.ge.f32.partialorder %v280_v52, 0.0 }
 0x132   :  { %v291_v57 = vmul.f32 0.2, %v282_v53  ;;  %400 = vmatmul.mubr.f32.vlgmr.msra.gmra.mrb[4].mxu1 %v292_v55  ;;  %vm287_vm3 = vcmp.ge.f32.partialorder %v282_v53, 0.0 }
 0x133   :  { %v294_v59 = vsel %vm286_vm4, %v280_v52, %v290_v56  ;;  %664 = vmatpush3.bf16.msra.mxu1 %v661_v62 }
 0x134   :  { %v295_v58 = vsel %vm287_vm3, %v282_v53, %v291_v57 }
 0x135   :  { %404 = vmatprep.mubr.f32.mxu1 %v295_v58 }
 0x136   :  { %405 = vmatmul.mubr.f32.gmra.mrb[6].mxu1 %v294_v59 }
 0x205   :  { %v544_v63 = vpop.f32.mrb[4].mxu1 }
 0x206   :  { %v545_v2 = vpop.f32.mrb[5].mxu1 }
 0x207   :  { %v546_v3 = vadd.f32 %v545_v2, %v544_v63 }
 0x209   :  { %v402_v4 = vadd.f32 %v546_v3, %v509_v1  ;;  %v547_v5 = vpop.f32.mrb[6].mxu1 }
 0x20a   :  { %v548_v6 = vpop.f32.mrb[7].mxu1 }
 0x20b   :  { %v412_v7 = vmul.f32 0.2, %v402_v4  ;;  %v549_v8 = vadd.f32 %v548_v6, %v547_v5  ;;  %vm410_vm5 = vcmp.ge.f32.partialorder %v402_v4, 0.0 }
 0x20d   :  { %v407_v9 = vadd.f32 %v549_v8, %v509_v1  ;;  %v414_v10 = vsel %vm410_vm5, %v402_v4, %v412_v7 }
 0x20e   :  { %558 = vmatprep.mubr.msk.f32.mxu1 %vm123_vm0, %v414_v10 }
 0x20f   :  { %vm411_vm6 = vcmp.ge.f32.partialorder %v407_v9, 0.0  ;;  %v413_v11 = vmul.f32 0.2, %v407_v9 }
 0x211   :  { %v415_v12 = vsel %vm411_vm6, %v407_v9, %v413_v11 }
 0x212   :  { %559 = vmatmul.mubr.msk.f32.vlgmr.msra.gmra.mrb[8].mxu1 %vm123_vm0, %v415_v12 }
 0x2e5   :  { %v560_v13 = vpop.f32.mrb[8].mxu1 }
 0x2e6   :  { %501 = vst.msk [vmem:[%s896_s6 + $0x8] sm:$0xff] %vm499_vm7, %v560_v13  ;;  %v490_v14 = vpop.f32.mrb[9].mxu1 }
 0x2e7   :  { %500 = vst.msk [vmem:[%s896_s6] sm:$0xff] %vm499_vm7, %v490_v14 }
 0x2e8   :  { %506 = vsyncpa [#allocation3], 1 }

</bundles_post_ra>
